<compile_context>
chip_gen: v5e
topology: v5e:2x2
jax: 0.10.0
libtpu: 0.0.40
codegen_flags: <defaults>
</compile_context>

<pallas_src>
import jax
import jax.numpy as jnp
from jax import lax
from jax.experimental import pallas as pl
from jax.experimental.pallas import tpu as pltpu


def _make_kernel(n, tile_rows, lanes, steps_per_split, needs_mask):
    def kernel(yt_ref, yp_ref, ms_ref, out_ref, acc_ref):
        c = pl.program_id(0)  # split index (parallel across cores)
        s = pl.program_id(1)  # step within split (arbitrary / reduction)

        @pl.when(s == 0)
        def _():
            acc_ref[...] = jnp.zeros_like(acc_ref)

        m = ms_ref[...].astype(jnp.float32)
        x = yp_ref[...].astype(jnp.float32) * m          # logits  (y1)
        z = yt_ref[...].astype(jnp.float32) * m          # targets (y2)

        # numerically-stable BCE-with-logits (matches torch / reference exactly)
        per_elem = jnp.maximum(x, 0.0) - x * z + jnp.log1p(jnp.exp(-jnp.abs(x)))

        if needs_mask:
            # Global flat index of every element of this tile; invalid elements
            # (zero padding past n, and clamped duplicate tiles) are excluded.
            # Padding is zero-filled so x/z are finite -> masking per_elem alone
            # is sufficient (single select per vreg).
            tile_idx = c * steps_per_split + s
            row0 = tile_idx * tile_rows
            rid = lax.broadcasted_iota(jnp.int32, (tile_rows, lanes), 0)
            lid = lax.broadcasted_iota(jnp.int32, (tile_rows, lanes), 1)
            flat = (row0 + rid) * lanes + lid
            per_elem = jnp.where(flat < n, per_elem, 0.0)

        acc_ref[...] += per_elem                         # elementwise VPU only

        @pl.when(s == steps_per_split - 1)
        def _():
            out_ref[0, 0] = jnp.sum(acc_ref[...])        # single reduce / split

    return kernel


def dmt_loss(y_true, y_pred, ms, *, tile_rows=1024, num_splits=2, lanes=128):
    """Pallas implementation of DMTLoss.forward(y_true, y_pred, ms)."""
    n = y_true.size
    tile_rows = max(8, (tile_rows // 8) * 8)

    rows = pl.cdiv(n, lanes)
    rows_p = pl.cdiv(rows, 8) * 8           # minimal sublane alignment
    padded = rows_p * lanes

    tile_rows_eff = min(tile_rows, rows_p)  # multiple of 8 by construction
    n_tiles = pl.cdiv(rows_p, tile_rows_eff)
    n_splits = max(1, min(num_splits, n_tiles))
    steps = pl.cdiv(n_tiles, n_splits)
    # Mask needed if the grid covers more (padded / duplicated) elements than n.
    needs_mask = (n_splits * steps * tile_rows_eff * lanes) != n

    def prep(a):
        a = a.reshape(-1)                   # free reshape for contiguous input
        if padded != n:                     # pad only when truly unaligned
            a = jnp.pad(a, (0, padded - n))
        return a.reshape(rows_p, lanes)     # keep native dtype (no astype)

    yt, yp, m = prep(y_true), prep(y_pred), prep(ms)

    def in_map(c, s):
        # Clamp so grid points past the real tile count re-read the last block
        # (their contribution is masked out in-kernel).
        return (jnp.minimum(c * steps + s, n_tiles - 1), 0)

    tile_spec = pl.BlockSpec((tile_rows_eff, lanes), in_map)

    kernel = _make_kernel(n, tile_rows_eff, lanes, steps, needs_mask)

    partials = pl.pallas_call(
        kernel,
        out_shape=jax.ShapeDtypeStruct((n_splits, 1), jnp.float32),
        grid_spec=pltpu.PrefetchScalarGridSpec(
            num_scalar_prefetch=0,
            grid=(n_splits, steps),
            in_specs=[tile_spec, tile_spec, tile_spec],
            out_specs=pl.BlockSpec((1, 1), lambda c, s: (c, 0),
                                   memory_space=pltpu.SMEM),
            scratch_shapes=[pltpu.VMEM((tile_rows_eff, lanes), jnp.float32)],
        ),
        compiler_params=pltpu.CompilerParams(
            dimension_semantics=("parallel", "arbitrary")),
    )(yt, yp, m)

    return jnp.sum(partials) / jnp.float32(n)   # mean reduction


def _reference(y_true, y_pred, ms):
    x = (y_pred * ms).astype(jnp.float32)
    z = (y_true * ms).astype(jnp.float32)
    per_elem = jnp.maximum(x, 0.0) - x * z + jnp.log1p(jnp.exp(-jnp.abs(x)))
    return jnp.mean(per_elem)


def _make_inputs(key, shape):
    k1, k2, k3 = jax.random.split(key, 3)
    y_pred = jax.random.normal(k1, shape, dtype=jnp.float32)                   # logits
    y_true = (jax.random.uniform(k2, shape) > 0.5).astype(jnp.float32)         # binary GT
    ms = (jax.random.uniform(k3, shape) > 0.3).astype(jnp.float32)             # morse mask
    return y_true, y_pred, ms


if __name__ == "__main__":
    # Primary case: aligned, single tile.
    yt, yp, m = _make_inputs(jax.random.PRNGKey(0), (2, 4, 16, 16))
    loss = jax.block_until_ready(dmt_loss(yt, yp, m))
    ref = jax.block_until_ready(_reference(yt, yp, m))
    assert jnp.allclose(loss, ref, rtol=1e-5, atol=1e-5), (loss, ref)

    # Multi-tile + two splits: exercises the parallel axis and accumulation.
    yt, yp, m = _make_inputs(jax.random.PRNGKey(1), (2, 4, 64, 64))
    loss = jax.block_until_ready(dmt_loss(yt, yp, m, tile_rows=64, num_splits=2))
    ref = jax.block_until_ready(_reference(yt, yp, m))
    assert jnp.allclose(loss, ref, rtol=1e-5, atol=1e-5), (loss, ref)

    # Unaligned n: exercises the minimal pad + in-kernel tail mask.
    yt, yp, m = _make_inputs(jax.random.PRNGKey(2), (2, 3, 15, 17))
    loss = jax.block_until_ready(dmt_loss(yt, yp, m))
    ref = jax.block_until_ready(_reference(yt, yp, m))
    assert jnp.allclose(loss, ref, rtol=1e-5, atol=1e-5), (loss, ref)

    # bf16 inputs streamed at native width (half HBM traffic), f32 math in-kernel.
    yt, yp, m = _make_inputs(jax.random.PRNGKey(3), (2, 4, 64, 64))
    loss = jax.block_until_ready(
        dmt_loss(yt.astype(jnp.bfloat16), yp.astype(jnp.bfloat16),
                 m.astype(jnp.bfloat16)))
    ref = jax.block_until_ready(
        _reference(yt.astype(jnp.bfloat16), yp.astype(jnp.bfloat16),
                   m.astype(jnp.bfloat16)))
    assert jnp.allclose(loss, ref, rtol=2e-2, atol=2e-2), (loss, ref)

    print("KERNEL_OK")
</pallas_src>

<mosaic_0001>
module attributes {stable_mosaic.version = 11 : i64} {
  func.func @kernel(%arg0: i32, %arg1: i32, %arg2: memref<16x128xf32, #tpu.memory_space<vmem>>, %arg3: memref<16x128xf32, #tpu.memory_space<vmem>>, %arg4: memref<16x128xf32, #tpu.memory_space<vmem>>, %arg5: memref<1x1xf32, #tpu.memory_space<smem>>, %arg6: memref<16x128xf32, #tpu.memory_space<vmem>>) attributes {dimension_semantics = [#tpu.dimension_semantics<parallel>, #tpu.dimension_semantics<arbitrary>], iteration_bounds = array<i64: 1, 1>, scalar_prefetch = 0 : i64, scratch_operands = 1 : i64, tpu.core_type = #tpu.core_type<tc>, window_params = [{transform_indices = @transform_0, window_bounds = array<i64: 16, 128>}, {transform_indices = @transform_1, window_bounds = array<i64: 16, 128>}, {transform_indices = @transform_2, window_bounds = array<i64: 16, 128>}, {transform_indices = @transform_3, window_bounds = array<i64: 1, 1>}]} {
    %c0_i32 = arith.constant 0 : i32
    %0 = arith.cmpi eq, %arg1, %c0_i32 : i32
    %1 = arith.extui %0 : i1 to i32
    %c0_i32_0 = arith.constant 0 : i32
    %2 = arith.cmpi ne, %1, %c0_i32_0 : i32
    scf.if %2 {
      %cst_13 = arith.constant 0.000000e+00 : f32
      %24 = vector.broadcast %cst_13 : f32 to vector<16x128xf32>
      %c0_14 = arith.constant 0 : index
      %c0_15 = arith.constant 0 : index
      %25 = vector.load %arg6[%c0_14, %c0_15] : memref<16x128xf32, #tpu.memory_space<vmem>>, vector<16x128xf32>
      tpu.vector_store %arg6[%c0_14, %c0_15], %24 {strides = array<i32>} : memref<16x128xf32, #tpu.memory_space<vmem>>, vector<16x128xf32>,
    } else {
    }
    %c0 = arith.constant 0 : index
    %c0_1 = arith.constant 0 : index
    %3 = vector.load %arg4[%c0, %c0_1] : memref<16x128xf32, #tpu.memory_space<vmem>>, vector<16x128xf32>
    %c0_2 = arith.constant 0 : index
    %c0_3 = arith.constant 0 : index
    %4 = vector.load %arg3[%c0_2, %c0_3] : memref<16x128xf32, #tpu.memory_space<vmem>>, vector<16x128xf32>
    %5 = arith.mulf %4, %3 : vector<16x128xf32>
    %c0_4 = arith.constant 0 : index
    %c0_5 = arith.constant 0 : index
    %6 = vector.load %arg2[%c0_4, %c0_5] : memref<16x128xf32, #tpu.memory_space<vmem>>, vector<16x128xf32>
    %7 = arith.mulf %6, %3 : vector<16x128xf32>
    %cst = arith.constant 0.000000e+00 : f32
    %8 = vector.broadcast %cst : f32 to vector<16x128xf32>
    %9 = arith.maximumf %5, %8 : vector<16x128xf32>
    %10 = arith.mulf %5, %7 : vector<16x128xf32>
    %11 = arith.subf %9, %10 : vector<16x128xf32>
    %12 = math.absf %5 : vector<16x128xf32>
    %cst_6 = arith.constant 0.000000e+00 : f32
    %13 = vector.broadcast %cst_6 : f32 to vector<16x128xf32>
    %14 = arith.subf %13, %12 : vector<16x128xf32>
    %15 = math.exp %14 : vector<16x128xf32>
    %16 = math.log1p %15 : vector<16x128xf32>
    %17 = arith.addf %11, %16 : vector<16x128xf32>
    %c0_7 = arith.constant 0 : index
    %c0_8 = arith.constant 0 : index
    %18 = vector.load %arg6[%c0_7, %c0_8] : memref<16x128xf32, #tpu.memory_space<vmem>>, vector<16x128xf32>
    %19 = arith.addf %18, %17 : vector<16x128xf32>
    %c0_9 = arith.constant 0 : index
    %c0_10 = arith.constant 0 : index
    %20 = vector.load %arg6[%c0_9, %c0_10] : memref<16x128xf32, #tpu.memory_space<vmem>>, vector<16x128xf32>
    tpu.vector_store %arg6[%c0_9, %c0_10], %19 {strides = array<i32>} : memref<16x128xf32, #tpu.memory_space<vmem>>, vector<16x128xf32>,
    %c0_i32_11 = arith.constant 0 : i32
    %21 = arith.cmpi eq, %arg1, %c0_i32_11 : i32
    %22 = arith.extui %21 : i1 to i32
    %c0_i32_12 = arith.constant 0 : i32
    %23 = arith.cmpi ne, %22, %c0_i32_12 : i32
    scf.if %23 {
      %c0_13 = arith.constant 0 : index
      %c0_14 = arith.constant 0 : index
      %24 = vector.load %arg6[%c0_13, %c0_14] : memref<16x128xf32, #tpu.memory_space<vmem>>, vector<16x128xf32>
      %25 = vector.shape_cast %24 : vector<16x128xf32> to vector<1x16x128xf32>
      %cst_15 = arith.constant dense<0.000000e+00> : vector<1xf32>
      %26 = vector.multi_reduction <add>, %25, %cst_15 [1, 2] : vector<1x16x128xf32> to vector<1xf32>
      %27 = vector.shape_cast %26 : vector<1xf32> to vector<1x1x1xf32>
      %28 = vector.extract %27[0, 0, 0] : f32 from vector<1x1x1xf32>
      %c0_16 = arith.constant 0 : index
      %c0_17 = arith.constant 0 : index
      %29 = memref.load %arg5[%c0_16, %c0_17] : memref<1x1xf32, #tpu.memory_space<smem>>
      memref.store %28, %arg5[%c0_16, %c0_17] : memref<1x1xf32, #tpu.memory_space<smem>>
    } else {
    }
    return
  }
  func.func @transform_0(%arg0: i32, %arg1: i32) -> (i32, i32) {
    %c1_i32 = arith.constant 1 : i32
    %0 = arith.muli %arg0, %c1_i32 : i32
    %1 = arith.addi %0, %arg1 : i32
    %c0_i32 = arith.constant 0 : i32
    %2 = arith.minsi %1, %c0_i32 : i32
    %c0_i32_0 = arith.constant 0 : i32
    %c0_i32_1 = arith.constant 0 : i32
    return %2, %c0_i32_0 : i32, i32
  }
  func.func @transform_1(%arg0: i32, %arg1: i32) -> (i32, i32) {
    %c1_i32 = arith.constant 1 : i32
    %0 = arith.muli %arg0, %c1_i32 : i32
    %1 = arith.addi %0, %arg1 : i32
    %c0_i32 = arith.constant 0 : i32
    %2 = arith.minsi %1, %c0_i32 : i32
    %c0_i32_0 = arith.constant 0 : i32
    %c0_i32_1 = arith.constant 0 : i32
    return %2, %c0_i32_0 : i32, i32
  }
  func.func @transform_2(%arg0: i32, %arg1: i32) -> (i32, i32) {
    %c1_i32 = arith.constant 1 : i32
    %0 = arith.muli %arg0, %c1_i32 : i32
    %1 = arith.addi %0, %arg1 : i32
    %c0_i32 = arith.constant 0 : i32
    %2 = arith.minsi %1, %c0_i32 : i32
    %c0_i32_0 = arith.constant 0 : i32
    %c0_i32_1 = arith.constant 0 : i32
    return %2, %c0_i32_0 : i32, i32
  }
  func.func @transform_3(%arg0: i32, %arg1: i32) -> (i32, i32) {
    %c0_i32 = arith.constant 0 : i32
    %c0_i32_0 = arith.constant 0 : i32
    return %arg0, %c0_i32 : i32, i32
  }
}

</mosaic_0001>

<bundles_post_ra>
// kernel: tpu_custom_call.1
= control target key start
LH: loop header
LB: loop body
LE: loop exit
PB: predicated region body
PF: predicated region fallthrough
CT: control target
= control target key end

     0   :  { %8 = vsyncpa [#allocation4], 0  ;;  %s332_s0 = inlined_call_operand.hbm [shape: f32[16,128], index: 0, kind: input, shape index: {}]   ;;  %s333_s1 = inlined_call_operand.hbm [shape: f32[16,128], index: 1, kind: input, shape index: {}]   ;;  %s334_s2 = inlined_call_operand.hbm [shape: f32[16,128], index: 2, kind: input, shape index: {}]   ;;  %s335_s3 = inlined_call_operand.hbm [shape: f32[1,1], index: 3, kind: output, shape index: {}]  }
   0x1   :  { %9 = vsyncpa [#allocation7], 0 }
   0x2   :  { %10 = vsyncpa [#allocation5], 0  ;;  %s40_s14 = sshll.u32 %s333_s1, 4  ;;  %s294_s15 = smov [#allocation6]   ;;  %s41_s14 = int_to_ptr.hbm [resolvable:$true] %s40_s14 }
   0x3   :  { %s42_s16 = sshll.u32 %s294_s15, 4  ;;  %s21_s19 = sshll.u32 %s332_s0, 4  ;;  %s43_s16 = int_to_ptr.vmem [resolvable:$true] %s42_s16  ;;  %s22_s19 = int_to_ptr.hbm [resolvable:$true] %s21_s19 }
   0x4   :  { %s295_s20 = smov 128   ;;  %s296_s21 = smov 8  }
   0x5   :  { %48 = dma.hbm_to_vmem [thread:$0]  %s41_s14, 256, %s43_s16, [#allocation7], %s295_s20, %s295_s20, %s296_s21  }
   0x6   :  { %s297_s22 = smov [#allocation3]   ;;  %s59_s26 = sshll.u32 %s334_s2, 4  ;;  %s60_s26 = int_to_ptr.hbm [resolvable:$true] %s59_s26 }
   0x7   :  { %s23_s23 = sshll.u32 %s297_s22, 4  ;;  %s298_s1 = smov [#allocation8]   ;;  %s24_s23 = int_to_ptr.vmem [resolvable:$true] %s23_s23 }
   0x8   :  { %29 = dma.hbm_to_vmem [thread:$0]  %s22_s19, 256, %s24_s23, [#allocation4], %s295_s20, %s295_s20, %s296_s21  }
   0x9   :  { %s61_s27 = sshll.u32 %s298_s1, 4  ;;  %s62_s27 = int_to_ptr.vmem [resolvable:$true] %s61_s27 }
   0xa   :  { %67 = dma.hbm_to_vmem [thread:$0]  %s60_s26, 256, %s62_s27, [#allocation7], %s295_s20, %s295_s20, %s296_s21  }
   0xb   :  { %288 = dma.done.wait [#allocation4], 256  }
   0xc   :  { %289 = vsyncadd [#allocation4], 4294967040 }
   0xd   :  { %290 = dma.done.wait [#allocation7], 512  }
   0xe   :  { %291 = vsyncadd [#allocation7], 4294966784  ;;  %v98_v0 = vld [vmem:[#allocation8] sm:$0xff]  ;;  %v99_v1 = vld [vmem:[#allocation8 + $0x8] sm:$0xff]  ;;  %s170_s28 = sshll.u32 %s335_s3, 4  ;;  %s299_s30 = smov [#allocation9]   ;;  %s171_s28 = int_to_ptr.hbm [resolvable:$true] %s170_s28 }
   0xf   :  { %v100_v2 = vld [vmem:[#allocation6] sm:$0xff]  ;;  %v101_v3 = vld [vmem:[#allocation6 + $0x8] sm:$0xff]  ;;  %v104_v12 = vld [vmem:[#allocation3] sm:$0xff] }
  0x10   :  { %v102_v4 = vmul.f32 %v100_v2, %v98_v0  ;;  %v103_v5 = vmul.f32 %v101_v3, %v99_v1  ;;  %v105_v13 = vld [vmem:[#allocation3 + $0x8] sm:$0xff]  ;;  %v106_v16 = vmul.f32 %v104_v12, %v98_v0 }
  0x11   :  { %v107_v19 = vmul.f32 %v105_v13, %v99_v1 }
  0x12   :  { %v114_v6 = vand.u32 2147483647, %v102_v4  ;;  %v115_v7 = vand.u32 2147483647, %v103_v5  ;;  %v108_v23 = vmax.f32 %v102_v4, 0.0  ;;  %v110_v24 = vmul.f32 %v106_v16, %v102_v4 }
  0x13   :  { %v109_v27 = vmax.f32 %v103_v5, 0.0  ;;  %v111_v28 = vmul.f32 %v107_v19, %v103_v5 }
  0x14   :  { %v116_v8 = vsub.f32 0.0, %v114_v6  ;;  %v117_v9 = vsub.f32 0.0, %v115_v7  ;;  %v112_v32 = vsub.f32 %v108_v23, %v110_v24 }
  0x15   :  { %v113_v35 = vsub.f32 %v109_v27, %v111_v28 }
  0x16   :  { %v118_v10 = vmul.f32 1.442695, %v116_v8  ;;  %v120_v11 = vmul.f32 1.442695, %v117_v9 }
  0x18   :  { %196 = vpow2.f32 %v118_v10 }
  0x19   :  { %198 = vpow2.f32 %v120_v11 }
  0x1e   :  { %v197_v14 = vpop.eup %196 }
  0x1f   :  { %v199_v15 = vpop.eup %198  ;;  %v122_v17 = vadd.f32 1.0, %v197_v14  ;;  %v125_v18 = vmul.f32 -0.5, %v197_v14  ;;  %v128_v25 = vand.u32 2147483647, %v197_v14 }
  0x20   :  { %v131_v20 = vadd.f32 1.0, %v199_v15  ;;  %v134_v21 = vmul.f32 -0.5, %v199_v15  ;;  %v137_v29 = vand.u32 2147483647, %v199_v15 }
  0x21   :  { %200 = vlog2.f32 %v122_v17  ;;  %v126_v22 = vadd.f32 1.0, %v125_v18  ;;  %vm129_vm0 = vcmp.lt.f32.partialorder %v128_v25, 0.0004427343 }
  0x22   :  { %202 = vlog2.f32 %v131_v20  ;;  %v135_v26 = vadd.f32 1.0, %v134_v21  ;;  %vm138_vm1 = vcmp.lt.f32.partialorder %v137_v29, 0.0004427343 }
  0x23   :  { %v127_v30 = vmul.f32 %v197_v14, %v126_v22 }
  0x24   :  { %v136_v33 = vmul.f32 %v199_v15, %v135_v26 }
  0x27   :  { %v201_v31 = vpop.eup %200 }
  0x28   :  { %v203_v34 = vpop.eup %202  ;;  %v124_v36 = vmul.f32 0.6931472, %v201_v31 }
  0x29   :  { %v133_v37 = vmul.f32 0.6931472, %v203_v34 }
  0x2a   :  { %v130_v38 = vsel %vm129_vm0, %v127_v30, %v124_v36 }
  0x2b   :  { %v139_v39 = vsel %vm138_vm1, %v136_v33, %v133_v37  ;;  %v140_v40 = vadd.f32 %v130_v38, %v112_v32 }
  0x2c   :  { %v141_v41 = vadd.f32 %v139_v39, %v113_v35 }
  0x2e   :  { %v153_v42 = vadd.f32 %v141_v41, %v140_v40 }
  0x30   :  { %154 = vadd.xlane.f32.xlu0 %v153_v42 }
  0xa3   :  { %v155_v43 = vpop.xlane.xlu0 %154 }
  0xa4   :  { %v156_v44 = vrot.slane %v155_v43, 4 }
  0xa6   :  { %v157_v45 = vadd.f32 %v156_v44, %v155_v43 }
  0xa8   :  { %v158_v46 = vrot.slane %v157_v45, 2 }
  0xaa   :  { %v159_v47 = vadd.f32 %v158_v46, %v157_v45 }
  0xac   :  { %v160_v48 = vrot.slane %v159_v47, 1 }
  0xae   :  { %v161_v49 = vadd.f32 %v160_v48, %v159_v47 }
  0xb0   :  { %188 = vpush %v161_v49 }
  0xe1   :  { %s189_s29 = spop %188 }
  0xe2   :  { %164 = sst [smem:[#allocation9]] %s189_s29 }
  0xe3   :  { %173 = dma.smem_to_hbm %s299_s30, 16, %s171_s28, [#allocation5]  }
  0xe4   :  { %292 = dma.done.wait [#allocation5], 16  }
  0xe5   :  { %293 = vsyncadd [#allocation5], 4294967280 }
  0xe6   :  { %178 = sfence }
  0xe7   :  { %179 = vsyncpa [#allocation4], 1 }
  0xe8   :  { %180 = vsyncpa [#allocation7], 1 }
  0xe9   :  { %181 = vsyncpa [#allocation5], 1 }

</bundles_post_ra>
